<compile_context>
chip_gen: v6e
topology: v6e:2x2x1
jax: 0.10.0
libtpu: 0.0.40
codegen_flags: <defaults>
</compile_context>

<pallas_src>
import functools
import math

import jax
import jax.numpy as jnp
from jax.experimental import pallas as pl
from jax.experimental.pallas import tpu as pltpu


def _softmax_kernel(x_ref, o_ref, *, inv_temp):
    # Whole (TR, C) tile is resident in VMEM. Numerically stable softmax
    # along the lane (last) axis.
    x = x_ref[...].astype(jnp.float32) * inv_temp
    m = jnp.max(x, axis=-1, keepdims=True)
    e = jnp.exp(x - m)                      # EUP
    s = jnp.sum(e, axis=-1, keepdims=True)  # XLU cross-lane reduce
    o_ref[...] = (e / s).astype(o_ref.dtype)


def differentiable_argmax(logits: jax.Array,
                          temperature: float = 0.1,
                          block_rows: int = 512) -> jax.Array:
    """softmax(logits / temperature, axis=-1) as a Pallas TPU kernel."""
    assert temperature != 0.0, "temperature must be non-zero"
    orig_shape = logits.shape
    C = orig_shape[-1]
    rows = int(math.prod(orig_shape[:-1])) if len(orig_shape) > 1 else 1
    x2 = logits.reshape(rows, C)

    # Tile rows: multiple of 8 (f32 sublane) when possible, otherwise fall
    # back to a full-extent block (which always satisfies the block rule).
    if rows % 8 == 0:
        tr = min(block_rows, rows)
        tr = max(8, (tr // 8) * 8)
    else:
        tr = rows
    grid = (pl.cdiv(rows, tr),)

    out = pl.pallas_call(
        functools.partial(_softmax_kernel, inv_temp=1.0 / float(temperature)),
        out_shape=jax.ShapeDtypeStruct((rows, C), logits.dtype),
        grid=grid,
        in_specs=[pl.BlockSpec((tr, C), lambda i: (i, 0))],
        out_specs=pl.BlockSpec((tr, C), lambda i: (i, 0)),
        compiler_params=pltpu.CompilerParams(
            dimension_semantics=("parallel",)),
    )(x2)
    return out.reshape(orig_shape)


if __name__ == "__main__":
    key = jax.random.PRNGKey(0)
    # Small shapes consistent with the module: batch=2, seq=8, classes=32.
    B, S, C = 2, 8, 32
    logits = jax.random.normal(key, (B, S, C), dtype=jnp.float32)

    temperature = 0.1
    # block_rows=8 exercises a multi-step grid (2 tiles) even at this size.
    out = differentiable_argmax(logits, temperature=temperature, block_rows=8)
    out = jax.block_until_ready(out)

    # Reference check against plain JAX (same semantics as the torch module).
    ref = jax.nn.softmax(logits / temperature, axis=-1)
    assert out.shape == ref.shape, (out.shape, ref.shape)
    assert out.dtype == ref.dtype, (out.dtype, ref.dtype)
    assert jnp.allclose(out, ref, rtol=1e-6, atol=1e-6), (
        "Pallas softmax mismatch vs reference")
    # Rows sum to 1.
    assert jnp.allclose(jnp.sum(out, axis=-1), 1.0, rtol=1e-5, atol=1e-5)

    print("KERNEL_OK")
</pallas_src>

<mosaic_0001>
module attributes {stable_mosaic.version = 11 : i64} {
  func.func @_softmax_kernel(%arg0: i32, %arg1: memref<8x32xf32, #tpu.memory_space<vmem>>, %arg2: memref<8x32xf32, #tpu.memory_space<vmem>>) attributes {dimension_semantics = [#tpu.dimension_semantics<parallel>], iteration_bounds = array<i64: 2>, scalar_prefetch = 0 : i64, scratch_operands = 0 : i64, tpu.core_type = #tpu.core_type<tc>, window_params = [{transform_indices = @transform_0, window_bounds = array<i64: 8, 32>}, {transform_indices = @transform_1, window_bounds = array<i64: 8, 32>}]} {
    %c0 = arith.constant 0 : index
    %c0_0 = arith.constant 0 : index
    %0 = vector.load %arg1[%c0, %c0_0] : memref<8x32xf32, #tpu.memory_space<vmem>>, vector<8x32xf32>
    %cst = arith.constant 1.000000e+01 : f32
    %1 = vector.broadcast %cst : f32 to vector<8x32xf32>
    %2 = arith.mulf %0, %1 : vector<8x32xf32>
    %cst_1 = arith.constant dense<0xFF800000> : vector<8xf32>
    %3 = vector.multi_reduction <maximumf>, %2, %cst_1 [1] : vector<8x32xf32> to vector<8xf32>
    %4 = vector.shape_cast %3 : vector<8xf32> to vector<8x1xf32>
    %5 = vector.broadcast %4 : vector<8x1xf32> to vector<8x32xf32>
    %6 = arith.subf %2, %5 : vector<8x32xf32>
    %7 = math.exp %6 : vector<8x32xf32>
    %cst_2 = arith.constant dense<0.000000e+00> : vector<8xf32>
    %8 = vector.multi_reduction <add>, %7, %cst_2 [1] : vector<8x32xf32> to vector<8xf32>
    %9 = vector.shape_cast %8 : vector<8xf32> to vector<8x1xf32>
    %10 = vector.broadcast %9 : vector<8x1xf32> to vector<8x32xf32>
    %11 = arith.divf %7, %10 : vector<8x32xf32>
    %c0_3 = arith.constant 0 : index
    %c0_4 = arith.constant 0 : index
    %12 = vector.load %arg2[%c0_3, %c0_4] : memref<8x32xf32, #tpu.memory_space<vmem>>, vector<8x32xf32>
    tpu.vector_store %arg2[%c0_3, %c0_4], %11 {strides = array<i32>} : memref<8x32xf32, #tpu.memory_space<vmem>>, vector<8x32xf32>,
    return
  }
  func.func @transform_0(%arg0: i32) -> (i32, i32) {
    %c0_i32 = arith.constant 0 : i32
    %c0_i32_0 = arith.constant 0 : i32
    return %arg0, %c0_i32 : i32, i32
  }
  func.func @transform_1(%arg0: i32) -> (i32, i32) {
    %c0_i32 = arith.constant 0 : i32
    %c0_i32_0 = arith.constant 0 : i32
    return %arg0, %c0_i32 : i32, i32
  }
}

</mosaic_0001>

<bundles_post_ra>
// kernel: tpu_custom_call.1
= control target key start
LH: loop header
LB: loop body
LE: loop exit
PB: predicated region body
PF: predicated region fallthrough
CT: control target
= control target key end

     0   :  { %6 = vsyncpa [#allocation3], 0  ;;  %s543_s0 = inlined_call_operand.hbm [shape: f32[16,32], index: 0, kind: input, shape index: {}]   ;;  %s544_s1 = inlined_call_operand.hbm [shape: f32[16,32], index: 1, kind: output, shape index: {}]  }
   0x1   :  { %8 = vsyncpa [#allocation3 + $0x1], 0 }
   0x2   :  { %9 = vsyncpa [#allocation4], 0 }
   0x3   :  { %11 = vsyncpa [#allocation4 + $0x1], 0  ;;  %s399_s6 = smov 0   ;;  %s401_s7 = smov 0  }
   0x4   :  { %s403_s8 = smov 0   ;;  %s405_s9 = smov 0  }
   0x5 LB: > { %s420_s10 = sadd.s32 4294967295, %s385_s9   ;;  %s231_s11 = sadd.s32 4294967294, %s385_s9   ;;  %s385_s9 = sphi %s405_s9, %s561_s9   ;;  %s381_s8 = sphi %s403_s8, %s560_s8   ;;  %s377_s7 = sphi %s401_s7, %s559_s7   ;;  %s373_s6 = sphi %s399_s6, %s558_s6  }
   0x6   : > { %s424_s12 = sadd.s32 1, %s385_s9   ;;  %s24_s13 = sadd.s32 1, %s381_s8 }
   0x7   : > { %s21_s14 = ssub.s32 %s385_s9, %s424_s12  ;;  %p31_p0 = scmp.ne.s32.totalorder %s381_s8, %s377_s7 }
   0x8   : > { %p22_p1 = scmp.eq.s32.totalorder %s21_s14, 0  ;;  %p32_p2 = scmp.eq.s32.totalorder %s385_s9, 0 }
   0x9   : > { %p37_p3 = scmp.ne.s32.totalorder %s377_s7, %s373_s6  ;;  %p38_p4 = scmp.eq.s32.totalorder %s420_s10, 0 }
   0xa   : > { %s436_s15 = scalar_select %p22_p1, %s381_s8, %s24_s13  }
   0xb   : > { %p438_p5 = por %p32_p2, %p31_p0  ;;  %p442_p6 = por %p38_p4, %p37_p3 }
   0xc   : > { %p61_p7 = scmp.eq.s32.totalorder %s420_s10, 1  ;;  %p67_p8 = scmp.eq.s32.totalorder %s231_s11, 1 }
   0xd   : > { %s548_s17 = scalar_select %p442_p6, 1, 0 }
   0xe   : > { %p255_p10 = scmp.lt.s32.totalorder %s385_s9, 2  ;;  %p449_p11 = por %p61_p7, %p31_p0 }
   0xf   : > { %p453_p12 = por %p67_p8, %p37_p3  ;;  %s87_s20 = sand.u32 1, %s381_s8  }
  0x10   : > { %s549_s18 = scalar_select %p449_p11, 1, 0 }
  0x11   : > { %s550_s19 = scalar_select %p453_p12, 1, 0 }
  0x12   : > { %s235_s21 = sshll.u32 %s385_s9, 7  ;;  %s234_s22 = sshll.u32 %s87_s20, 3 }
  0x13   : > { %s462_s25 = scalar_lea.hbm %s543_s0, %s235_s21  ;;  %s91_s26 = scalar_lea.vmem [#allocation2], %s234_s22 }
  0x14   : > { %s98_s27 = sshll.u32 %s91_s26, 4  ;;  %p466_p13 = pnand %p255_p10, %p438_p5  ;;  %s470_s27 = int_to_ptr.vmem [resolvable:$true] %s98_s27 }
  0x15   : > { %s88_s29 = scalar_lea.sflag [#allocation3], %s87_s20  ;;  %s293_s30 = scalar_lea.hbm %s462_s25, 128 }
  0x16   : > { %p294_p2 = scmp.ne.s32.totalorder %s462_s25, %s293_s30  ;;  %p295_p3 = pneg %p466_p13 }
  0x17   : > { %s298_s4 = scalar_lea.hbm %s543_s0, 256  ;;  %p299_p5 = scmp.lt.s32.totalorder %s462_s25, %s543_s0 }
  0x18   : > { %p296_p4 = pnand %p295_p3, %p294_p2  ;;  %p300_p8 = scmp.lt.s32.totalorder %s298_s4, %s293_s30 }
  0x1a   : > { %p297_p7 = pneg %p296_p4  ;;  %p301_p10 = por %p300_p8, %p299_p5 }
  0x1c   : > { %p302_p9 = pnand %p301_p10, %p297_p7 }
  0x1e   : > { %305 = shalt.err (!%p302_p9)
}
  0x1f   : > { %s306_s13 = scalar_lea.vmem %s470_s27, 128  ;;  %s387_s14 = smov [#allocation2]  }
  0x20   : > { %p307_p0 = scmp.ne.s32.totalorder %s470_s27, %s306_s13  ;;  %s311_s16 = sshll.u32 %s387_s14, 4  ;;  %s312_s16 = int_to_ptr.vmem [resolvable:$false] %s311_s16 }
  0x21   : > { %s313_s20 = scalar_lea.vmem %s312_s16, 256  ;;  %p314_p4 = scmp.lt.s32.totalorder %s470_s27, %s312_s16 }
  0x22   : > { %p309_p1 = pnand %p307_p0, %p295_p3  ;;  %p315_p12 = scmp.lt.s32.totalorder %s313_s20, %s306_s13 }
  0x24   : > { %p310_p2 = pneg %p309_p1  ;;  %p316_p11 = por %p315_p12, %p314_p4 }
  0x26   : > { %p317_p6 = pnand %p316_p11, %p310_p2 }
  0x28   : > { %320 = shalt.err (!%p317_p6)
}
  0x29   : > { %250 = dma.hbm_to_vmem [thread:$0]  (!%p466_p13), %s462_s25, 128, %s470_s27, %s88_s29  }
  0x2a   : > { %p552_p9 = scmp.lt.s32.totalorder %s385_s9, 3  ;;  %p553_p7 = scmp.ge.s32.totalorder %s385_s9, 1 }
  0x2c   : > { %p104_p0 = pnand %p553_p7, %p552_p9 }
  0x2d   : > { %s497_s21 = sand.u32 (!%p104_p0), 1, %s377_s7   ;;  %p554_p6 = scmp.ne.s32.totalorder (!%p104_p0), %s548_s17, 0 }
  0x2e   : > { %107 = sbr.rel (%p104_p0) target bundleno = 380 (0x17c), region = 24  ;;  %s237_s22 = sshll.u32 (!%p104_p0), %s497_s21, 3 }
  0x2f   : > { %s110_s23 = scalar_lea.sflag (!%p104_p0), [#allocation3], %s497_s21  ;;  %s113_s24 = scalar_lea.vmem (!%p104_p0), [#allocation2], %s237_s22 }
  0x33   : > { %364 = dma.done.wait (%p554_p6), %s110_s23, 128  }
  0x34   : > { %366 = vsyncadd (%p554_p6), %s110_s23, 4294967168  ;;  %v132_v0 = vld [vmem:[%s113_s24] sm:$0xff]  ;;  %vm134_vm0 = vcmask 261120   ;;  %s240_s17 = sshll.u32 %s420_s10, 7  ;;  %s131_s25 = scalar_lea.vmem [#allocation5], %s237_s22 }
  0x35   : > { %v133_v1 = vmul.f32 10.0, %v132_v0  ;;  %s161_s26 = sshll.u32 %s131_s25, 4  ;;  %s159_s29 = scalar_lea.hbm %s544_s1, %s240_s17  ;;  %s162_s26 = int_to_ptr.vmem [resolvable:$true] %s161_s26 }
  0x36   : > { %s148_s30 = scalar_lea.sflag [#allocation4], %s497_s21  ;;  %s321_s2 = scalar_lea.vmem %s162_s26, 128 }
  0x37   : > { %v135_v2 = vsel %vm134_vm0, %v133_v1, -inf  ;;  %p322_p11 = scmp.ne.s32.totalorder %s162_s26, %s321_s2  ;;  %p555_p12 = scmp.ne.s32.totalorder %s549_s18, 0 }
  0x38   : > { %136 = vmax.xlane.f32.xlu0 %v135_v2  ;;  %s388_s3 = smov [#allocation5]  }
  0x39   : > { %p323_p13 = pnand %p322_p11, %p555_p12  ;;  %s325_s4 = sshll.u32 %s388_s3, 4  ;;  %s326_s4 = int_to_ptr.vmem [resolvable:$false] %s325_s4 }
  0x3a   : > { %s327_s10 = scalar_lea.vmem %s326_s4, 256  ;;  %p328_p3 = scmp.lt.s32.totalorder %s162_s26, %s326_s4 }
  0x3b   : > { %p324_p1 = pneg %p323_p13  ;;  %p329_p5 = scmp.lt.s32.totalorder %s327_s10, %s321_s2 }
  0x3d   : > { %p330_p8 = por %p329_p5, %p328_p3 }
  0x3f   : > { %p331_p10 = pnand %p330_p8, %p324_p1 }
  0xc1   : > { %v137_v3 = vpop.xlane.xlu0 %136 }
  0xc2   : > { %v138_v4 = vsub.f32 %v133_v1, %v137_v3 }
  0xc4   : > { %v139_v5 = vmul.f32 1.442695, %v138_v4 }
  0xc6   : > { %289 = vpow2.f32 %v139_v5 }
  0xd3   : > { %v290_v6 = vpop.eup %289 }
  0xd4   : > { %v141_v7 = vsel %vm134_vm0, %v290_v6, 0.0 }
  0xd5   : > { %142 = vadd.xlane.f32.xlu0 %v141_v7 }
 0x15e   : > { %v143_v8 = vpop.xlane.xlu0 %142 }
 0x15f   : > { %291 = vrcp.f32 %v143_v8 }
 0x16c   : > { %v292_v9 = vpop.eup %291 }
 0x16d   : > { %v145_v10 = vmul.f32 %v292_v9, %v290_v6 }
 0x16f   : > { %146 = vst.msk [vmem:[%s131_s25] sm:$0xff] %vm134_vm0, %v145_v10 }
 0x170   : > { %334 = shalt.err (!%p331_p10)
}
 0x171   : > { %s335_s5 = scalar_lea.hbm %s159_s29, 128  ;;  %s339_s14 = scalar_lea.hbm %s544_s1, 256 }
 0x172   : > { %p336_p2 = scmp.ne.s32.totalorder %s159_s29, %s335_s5  ;;  %p340_p7 = scmp.lt.s32.totalorder %s159_s29, %s544_s1 }
 0x173   : > { %p341_p0 = scmp.lt.s32.totalorder %s339_s14, %s335_s5 }
 0x174   : > { %p337_p4 = pnand %p336_p2, %p555_p12 }
 0x175   : > { %p342_p6 = por %p341_p0, %p340_p7 }
 0x176   : > { %p338_p9 = pneg %p337_p4 }
 0x178   : > { %p343_p11 = pnand %p342_p6, %p338_p9 }
 0x17a   : > { %346 = shalt.err (!%p343_p11)
}
 0x17b   : > { %245 = dma.vmem_to_hbm [thread:$0]  (%p555_p12), %s162_s26, 128, %s159_s29, %s148_s30  }
 0x17c PF: > { %s173_s21 = sand.u32 1, %s373_s6   ;;  %p556_p13 = scmp.ne.s32.totalorder %s550_s19, 0 }
 0x17d   : > { %p557_p1 = scmp.ge.s32.totalorder %s385_s9, 2  ;;  %s174_s22 = scalar_lea.sflag [#allocation4], %s173_s21 }
 0x17f   : > { %p252_p3 = pnand %p557_p1, %p556_p13 }
 0x181   : > { %p253_p5 = pneg %p252_p3 }
 0x183   : > { %368 = dma.done.wait (%p253_p5), %s174_s22, 128  }
 0x184   : > { %370 = vsyncadd (%p253_p5), %s174_s22, 4294967168  ;;  %p14_p8 = scmp.ge.s32.totalorder %s424_s12, 4   ;;  %s558_s6 = smov %s377_s7 }
 0x185   : > { %s559_s7 = smov %s381_s8  ;;  %s560_s8 = smov %s436_s15 }
 0x186   : > { %s561_s9 = smov %s424_s12  ;;  %16 = sbr.rel (!%p14_p8) target bundleno = 5 (0x5), region = 69 }
 0x18b   :  { %179 = vsyncpa [#allocation3], 1 }
 0x18c   :  { %181 = vsyncpa [#allocation3 + $0x1], 1 }
 0x18d   :  { %182 = vsyncpa [#allocation4], 1 }
 0x18e   :  { %184 = vsyncpa [#allocation4 + $0x1], 1 }

</bundles_post_ra>
